<compile_context>
chip_gen: v6e
topology: v6e:2x2x1
jax: 0.10.0
libtpu: 0.0.40
codegen_flags: <defaults>
</compile_context>

<pallas_src>
import functools

import jax
import jax.numpy as jnp
from jax.experimental import pallas as pl
from jax.experimental.pallas import tpu as pltpu


def _vmem_budget_bytes():
    """Usable VMEM budget (bytes), derived from the chip with a safe fallback."""
    try:
        cap = int(pltpu.get_tpu_info().vmem_capacity_bytes)  # 128 MiB v5e/v6e, 64 MiB v7x
    except Exception:
        cap = 64 * 1024 * 1024
    return max(32 * 1024 * 1024, (cap * 3) // 4)  # leave headroom below physical


def _choose_row_tile(n_rows, n_cols, vmem_budget_bytes):
    """Pick a row tile: ~1/16 of the budget per f32 block.

    Per grid step we hold 2 inputs x 2 pipeline buffers plus several full-tile f32
    temporaries inside the kernel body, so 1/16 of the budget per block keeps the
    peak comfortably under the limit while making blocks multi-MiB.
    """
    block_bytes = max(vmem_budget_bytes // 16, 8 * n_cols * 4)
    rt = block_bytes // (n_cols * 4)
    if rt >= n_rows:
        return n_rows          # single block == full array dims (always legal)
    return max(8, (rt // 8) * 8)


def _js_div_kernel(p_ref, q_ref, o_ref, *, n_rows, row_tile):
    p = p_ref[...].astype(jnp.float32)
    q = q_ref[...].astype(jnp.float32)

    # log-softmax along the lane (class) axis; exp() computed once and reused for
    # both log-softmax and softmax (saves two full-tile EUP exps per element).
    p_shift = p - jnp.max(p, axis=-1, keepdims=True)
    e_p = jnp.exp(p_shift)
    sum_p = jnp.sum(e_p, axis=-1, keepdims=True)
    log_p = p_shift - jnp.log(sum_p)
    p_s = e_p * (1.0 / sum_p)          # per-row exact reciprocal, VPU broadcast-mul

    q_shift = q - jnp.max(q, axis=-1, keepdims=True)
    e_q = jnp.exp(q_shift)
    sum_q = jnp.sum(e_q, axis=-1, keepdims=True)
    log_q = q_shift - jnp.log(sum_q)
    q_s = e_q * (1.0 / sum_q)

    m = jnp.log(0.5 * (p_s + q_s))

    # pointwise KL terms (log_target=True):  exp(target) * (target - input)
    contrib = p_s * (log_p - m) + q_s * (log_q - m)

    # mask rows of the (possibly padded) tail block that lie beyond the real row count
    row0 = pl.program_id(0) * row_tile
    row_ids = row0 + jax.lax.broadcasted_iota(jnp.int32, contrib.shape, 0)
    contrib = jnp.where(row_ids < n_rows, contrib, 0.0)

    partial = jnp.sum(contrib)

    # write this block's partial sum into element (0, 0) of its private (8, 128) tile
    r = jax.lax.broadcasted_iota(jnp.int32, o_ref.shape, 0)
    c = jax.lax.broadcasted_iota(jnp.int32, o_ref.shape, 1)
    o_ref[...] = jnp.where((r == 0) & (c == 0), partial, 0.0)


def js_div(p, q):
    assert p.shape == q.shape
    C = p.shape[-1]
    p2 = p.reshape(-1, C)   # bf16 inputs are fine too; kernel upcasts to f32 in VMEM
    q2 = q.reshape(-1, C)
    N = p2.shape[0]

    budget = _vmem_budget_bytes()
    rt = _choose_row_tile(N, C, budget)
    num_blocks = pl.cdiv(N, rt)

    kernel = functools.partial(_js_div_kernel, n_rows=N, row_tile=rt)

    partials = pl.pallas_call(
        kernel,
        out_shape=jax.ShapeDtypeStruct((num_blocks * 8, 128), jnp.float32),
        grid_spec=pltpu.PrefetchScalarGridSpec(
            num_scalar_prefetch=0,
            grid=(num_blocks,),
            in_specs=[
                pl.BlockSpec((rt, C), lambda i: (i, 0)),
                pl.BlockSpec((rt, C), lambda i: (i, 0)),
            ],
            out_specs=pl.BlockSpec((8, 128), lambda i: (i, 0)),
        ),
        compiler_params=pltpu.CompilerParams(
            dimension_semantics=("parallel",),   # independent blocks -> megacore-friendly
            vmem_limit_bytes=budget,
        ),
    )(p2, q2)

    # tiny final reduction + batchmean / 0.5 scaling in plain JAX
    return jnp.sum(partials) * (0.5 / N)


def _js_div_ref(p, q):
    # pure-JAX reference mirroring the PyTorch module
    C = p.shape[-1]
    p_s = jax.nn.softmax(p.astype(jnp.float32), axis=-1).reshape(-1, C)
    q_s = jax.nn.softmax(q.astype(jnp.float32), axis=-1).reshape(-1, C)
    m = jnp.log(0.5 * (p_s + q_s))
    n = p_s.shape[0]
    kl_pm = jnp.sum(p_s * (jnp.log(p_s) - m)) / n
    kl_qm = jnp.sum(q_s * (jnp.log(q_s) - m)) / n
    return 0.5 * (kl_pm + kl_qm)


if __name__ == "__main__":
    key = jax.random.PRNGKey(0)
    k1, k2 = jax.random.split(key)
    # batch=2, seq=8, hidden=32  -> flattened to 16 rows x 32 classes
    # TODO(synk): for real workloads with C < 128, fold rows into the lane axis in the
    # wrapper to avoid idle lanes; left as-is here to keep the module's layout explicit.
    p = jax.random.normal(k1, (2, 8, 32), dtype=jnp.float32)
    q = jax.random.normal(k2, (2, 8, 32), dtype=jnp.float32)

    out = js_div(p, q)
    jax.block_until_ready(out)

    ref = _js_div_ref(p, q)
    assert jnp.allclose(out, ref, rtol=1e-5, atol=1e-6), (out, ref)

    print("KERNEL_OK")
</pallas_src>

<mosaic_0001>
module attributes {stable_mosaic.version = 11 : i64} {
  func.func @_js_div_kernel(%arg0: i32, %arg1: memref<16x32xf32, #tpu.memory_space<vmem>>, %arg2: memref<16x32xf32, #tpu.memory_space<vmem>>, %arg3: memref<8x128xf32, #tpu.memory_space<vmem>>) attributes {dimension_semantics = [#tpu.dimension_semantics<parallel>], iteration_bounds = array<i64: 1>, scalar_prefetch = 0 : i64, scratch_operands = 0 : i64, tpu.core_type = #tpu.core_type<tc>, window_params = [{transform_indices = @transform_0, window_bounds = array<i64: 16, 32>}, {transform_indices = @transform_1, window_bounds = array<i64: 16, 32>}, {transform_indices = @transform_2, window_bounds = array<i64: 8, 128>}]} {
    %c0 = arith.constant 0 : index
    %c0_0 = arith.constant 0 : index
    %0 = vector.load %arg1[%c0, %c0_0] : memref<16x32xf32, #tpu.memory_space<vmem>>, vector<16x32xf32>
    %c0_1 = arith.constant 0 : index
    %c0_2 = arith.constant 0 : index
    %1 = vector.load %arg2[%c0_1, %c0_2] : memref<16x32xf32, #tpu.memory_space<vmem>>, vector<16x32xf32>
    %cst = arith.constant dense<0xFF800000> : vector<16xf32>
    %2 = vector.multi_reduction <maximumf>, %0, %cst [1] : vector<16x32xf32> to vector<16xf32>
    %3 = vector.shape_cast %2 : vector<16xf32> to vector<16x1xf32>
    %4 = vector.broadcast %3 : vector<16x1xf32> to vector<16x32xf32>
    %5 = arith.subf %0, %4 : vector<16x32xf32>
    %6 = math.exp %5 : vector<16x32xf32>
    %cst_3 = arith.constant dense<0.000000e+00> : vector<16xf32>
    %7 = vector.multi_reduction <add>, %6, %cst_3 [1] : vector<16x32xf32> to vector<16xf32>
    %8 = vector.shape_cast %7 : vector<16xf32> to vector<16x1xf32>
    %9 = math.log %8 : vector<16x1xf32>
    %10 = vector.broadcast %9 : vector<16x1xf32> to vector<16x32xf32>
    %11 = arith.subf %5, %10 : vector<16x32xf32>
    %cst_4 = arith.constant 1.000000e+00 : f32
    %12 = vector.broadcast %cst_4 : f32 to vector<16x1xf32>
    %13 = arith.divf %12, %8 : vector<16x1xf32>
    %14 = vector.broadcast %13 : vector<16x1xf32> to vector<16x32xf32>
    %15 = arith.mulf %6, %14 : vector<16x32xf32>
    %cst_5 = arith.constant dense<0xFF800000> : vector<16xf32>
    %16 = vector.multi_reduction <maximumf>, %1, %cst_5 [1] : vector<16x32xf32> to vector<16xf32>
    %17 = vector.shape_cast %16 : vector<16xf32> to vector<16x1xf32>
    %18 = vector.broadcast %17 : vector<16x1xf32> to vector<16x32xf32>
    %19 = arith.subf %1, %18 : vector<16x32xf32>
    %20 = math.exp %19 : vector<16x32xf32>
    %cst_6 = arith.constant dense<0.000000e+00> : vector<16xf32>
    %21 = vector.multi_reduction <add>, %20, %cst_6 [1] : vector<16x32xf32> to vector<16xf32>
    %22 = vector.shape_cast %21 : vector<16xf32> to vector<16x1xf32>
    %23 = math.log %22 : vector<16x1xf32>
    %24 = vector.broadcast %23 : vector<16x1xf32> to vector<16x32xf32>
    %25 = arith.subf %19, %24 : vector<16x32xf32>
    %cst_7 = arith.constant 1.000000e+00 : f32
    %26 = vector.broadcast %cst_7 : f32 to vector<16x1xf32>
    %27 = arith.divf %26, %22 : vector<16x1xf32>
    %28 = vector.broadcast %27 : vector<16x1xf32> to vector<16x32xf32>
    %29 = arith.mulf %20, %28 : vector<16x32xf32>
    %30 = arith.addf %15, %29 : vector<16x32xf32>
    %cst_8 = arith.constant 5.000000e-01 : f32
    %31 = vector.broadcast %cst_8 : f32 to vector<16x32xf32>
    %32 = arith.mulf %31, %30 : vector<16x32xf32>
    %33 = math.log %32 : vector<16x32xf32>
    %34 = arith.subf %11, %33 : vector<16x32xf32>
    %35 = arith.mulf %15, %34 : vector<16x32xf32>
    %36 = arith.subf %25, %33 : vector<16x32xf32>
    %37 = arith.mulf %29, %36 : vector<16x32xf32>
    %38 = arith.addf %35, %37 : vector<16x32xf32>
    %c16_i32 = arith.constant 16 : i32
    %39 = arith.muli %arg0, %c16_i32 : i32
    %40 = tpu.iota {dimensions = array<i32: 0>} : vector<16x32xi32>
    %41 = vector.broadcast %39 : i32 to vector<16x32xi32>
    %42 = arith.addi %41, %40 : vector<16x32xi32>
    %c16_i32_9 = arith.constant 16 : i32
    %43 = vector.broadcast %c16_i32_9 : i32 to vector<16x32xi32>
    %44 = arith.cmpi slt, %42, %43 : vector<16x32xi32>
    %cst_10 = arith.constant 0.000000e+00 : f32
    %45 = vector.broadcast %cst_10 : f32 to vector<16x32xf32>
    %46 = arith.select %44, %38, %45 : vector<16x32xi1>, vector<16x32xf32>
    %47 = vector.shape_cast %46 : vector<16x32xf32> to vector<1x16x32xf32>
    %cst_11 = arith.constant dense<0.000000e+00> : vector<1xf32>
    %48 = vector.multi_reduction <add>, %47, %cst_11 [1, 2] : vector<1x16x32xf32> to vector<1xf32>
    %49 = vector.shape_cast %48 : vector<1xf32> to vector<1x1x1xf32>
    %50 = vector.extract %49[0, 0, 0] : f32 from vector<1x1x1xf32>
    %51 = tpu.iota {dimensions = array<i32: 0>} : vector<8x128xi32>
    %52 = tpu.iota {dimensions = array<i32: 1>} : vector<8x128xi32>
    %c0_i32 = arith.constant 0 : i32
    %53 = vector.broadcast %c0_i32 : i32 to vector<8x128xi32>
    %54 = arith.cmpi eq, %51, %53 : vector<8x128xi32>
    %c0_i32_12 = arith.constant 0 : i32
    %55 = vector.broadcast %c0_i32_12 : i32 to vector<8x128xi32>
    %56 = arith.cmpi eq, %52, %55 : vector<8x128xi32>
    %57 = arith.andi %54, %56 : vector<8x128xi1>
    %cst_13 = arith.constant 0.000000e+00 : f32
    %58 = vector.broadcast %50 : f32 to vector<8x128xf32>
    %59 = vector.broadcast %cst_13 : f32 to vector<8x128xf32>
    %60 = arith.select %57, %58, %59 : vector<8x128xi1>, vector<8x128xf32>
    %c0_14 = arith.constant 0 : index
    %c0_15 = arith.constant 0 : index
    %61 = vector.load %arg3[%c0_14, %c0_15] : memref<8x128xf32, #tpu.memory_space<vmem>>, vector<8x128xf32>
    tpu.vector_store %arg3[%c0_14, %c0_15], %60 {strides = array<i32>} : memref<8x128xf32, #tpu.memory_space<vmem>>, vector<8x128xf32>,
    return
  }
  func.func @transform_0(%arg0: i32) -> (i32, i32) {
    %c0_i32 = arith.constant 0 : i32
    %c0_i32_0 = arith.constant 0 : i32
    return %arg0, %c0_i32 : i32, i32
  }
  func.func @transform_1(%arg0: i32) -> (i32, i32) {
    %c0_i32 = arith.constant 0 : i32
    %c0_i32_0 = arith.constant 0 : i32
    return %arg0, %c0_i32 : i32, i32
  }
  func.func @transform_2(%arg0: i32) -> (i32, i32) {
    %c0_i32 = arith.constant 0 : i32
    %c0_i32_0 = arith.constant 0 : i32
    return %arg0, %c0_i32 : i32, i32
  }
}

</mosaic_0001>

<bundles_post_ra>
// kernel: tpu_custom_call.1
= control target key start
LH: loop header
LB: loop body
LE: loop exit
PB: predicated region body
PF: predicated region fallthrough
CT: control target
= control target key end

     0   :  { %7 = vsyncpa [#allocation3], 0  ;;  %s326_s0 = inlined_call_operand.hbm [shape: f32[16,32], index: 0, kind: input, shape index: {}]   ;;  %s327_s1 = inlined_call_operand.hbm [shape: f32[16,32], index: 1, kind: input, shape index: {}]   ;;  %s328_s2 = inlined_call_operand.hbm [shape: f32[8,128], index: 2, kind: output, shape index: {}]  }
   0x1   :  { %8 = vsyncpa [#allocation6], 0 }
   0x2   :  { %9 = vsyncpa [#allocation4], 0  ;;  %s271_s9 = smov [#allocation2]  }
   0x3   :  { %s15_s10 = sshll.u32 %s271_s9, 4  ;;  %s16_s10 = int_to_ptr.vmem [resolvable:$true] %s15_s10 }
   0x4   :  { %s213_s11 = scalar_lea.vmem %s16_s10, 256  ;;  %p218_p1 = scmp.lt.s32.totalorder %s16_s10, %s16_s10 }
   0x5   :  { %p214_p0 = scmp.ne.s32.totalorder %s16_s10, %s213_s11  ;;  %p219_p2 = scmp.lt.s32.totalorder %s213_s11, %s213_s11 }
   0x7   :  { %p220_p3 = por %p219_p2, %p218_p1 }
   0x9   :  { %p221_p4 = pnand %p220_p3, %p214_p0 }
   0xb   :  { %224 = shalt.err (!%p221_p4)
}
   0xc   :  { %s272_s12 = smov 128   ;;  %s273_s13 = smov 8  }
   0xd   :  { %21 = dma.hbm_to_vmem [thread:$0]  %s326_s0, 256, %s16_s10, [#allocation3], %s272_s12, %s272_s12, %s273_s13  }
   0xe   :  { %s274_s16 = smov [#allocation5]  }
   0xf   :  { %s27_s17 = sshll.u32 %s274_s16, 4  ;;  %s28_s17 = int_to_ptr.vmem [resolvable:$true] %s27_s17 }
  0x10   :  { %s233_s18 = scalar_lea.vmem %s28_s17, 256  ;;  %p238_p6 = scmp.lt.s32.totalorder %s28_s17, %s28_s17 }
  0x11   :  { %p234_p5 = scmp.ne.s32.totalorder %s28_s17, %s233_s18  ;;  %p239_p7 = scmp.lt.s32.totalorder %s233_s18, %s233_s18 }
  0x13   :  { %p240_p8 = por %p239_p7, %p238_p6 }
  0x15   :  { %p241_p9 = pnand %p240_p8, %p234_p5 }
  0x17   :  { %244 = shalt.err (!%p241_p9)
}
  0x18   :  { %33 = dma.hbm_to_vmem [thread:$0]  %s327_s1, 256, %s28_s17, [#allocation6], %s272_s12, %s272_s12, %s273_s13  }
  0x19   :  { %265 = dma.done.wait [#allocation3], 256  }
  0x1a   :  { %266 = vsyncadd [#allocation3], 4294967040 }
  0x1b   :  { %267 = dma.done.wait [#allocation6], 256  }
  0x1c   :  { %268 = vsyncadd [#allocation6], 4294967040  ;;  %vm44_vm0 = vcmask 261120   ;;  %v40_v0 = vld [vmem:[#allocation2] sm:$0xff]  ;;  %v42_v1 = vld [vmem:[#allocation5] sm:$0xff]  ;;  %s275_s0 = smov [#allocation7]  }
  0x1d   :  { %v41_v2 = vld [vmem:[#allocation2 + $0x8] sm:$0xff]  ;;  %v45_v3 = vsel %vm44_vm0, %v40_v0, -inf  ;;  %v75_v4 = vsel %vm44_vm0, %v42_v1, -inf  ;;  %v43_v5 = vld [vmem:[#allocation5 + $0x8] sm:$0xff]  ;;  %s160_s1 = sshll.u32 %s275_s0, 4  ;;  %s161_s1 = int_to_ptr.vmem [resolvable:$true] %s160_s1 }
  0x1e   :  { %46 = vmax.xlane.f32.xlu0 %v45_v3  ;;  %76 = vmax.xlane.f32.xlu1 %v75_v4  ;;  %v48_v6 = vsel %vm44_vm0, %v41_v2, -inf  ;;  %v78_v7 = vsel %vm44_vm0, %v43_v5, -inf  ;;  %s245_s22 = scalar_lea.vmem %s161_s1, 128  ;;  %p250_p11 = scmp.lt.s32.totalorder %s161_s1, %s161_s1 }
  0x1f   :  { %p246_p10 = scmp.ne.s32.totalorder %s161_s1, %s245_s22  ;;  %p251_p12 = scmp.lt.s32.totalorder %s245_s22, %s245_s22 }
  0x21   :  { %p252_p13 = por %p251_p12, %p250_p11 }
  0x22   :  { %49 = vmax.xlane.f32.xlu0 %v48_v6  ;;  %79 = vmax.xlane.f32.xlu1 %v78_v7 }
  0x23   :  { %p253_p0 = pnand %p252_p13, %p246_p10 }
  0xa7   :  { %v47_v8 = vpop.xlane.xlu0 %46  ;;  %v77_v9 = vpop.xlane.xlu1 %76 }
  0xa8   :  { %v301_v10 = vsub.f32 %v40_v0, %v47_v8  ;;  %v303_v11 = vsub.f32 %v42_v1, %v77_v9 }
  0xaa   :  { %v53_v12 = vmul.f32 1.442695, %v301_v10  ;;  %v83_v13 = vmul.f32 1.442695, %v303_v11 }
  0xab   :  { %v50_v14 = vpop.xlane.xlu0 %49  ;;  %v80_v15 = vpop.xlane.xlu1 %79 }
  0xac   :  { %177 = vpow2.f32 %v53_v12  ;;  %v307_v16 = vsub.f32 %v41_v2, %v50_v14  ;;  %v309_v17 = vsub.f32 %v43_v5, %v80_v15 }
  0xad   :  { %179 = vpow2.f32 %v83_v13 }
  0xae   :  { %v55_v18 = vmul.f32 1.442695, %v307_v16  ;;  %v85_v19 = vmul.f32 1.442695, %v309_v17 }
  0xb0   :  { %181 = vpow2.f32 %v55_v18 }
  0xb1   :  { %183 = vpow2.f32 %v85_v19 }
  0xb9   :  { %v178_v20 = vpop.eup %177 }
  0xba   :  { %v180_v21 = vpop.eup %179  ;;  %v57_v22 = vsel %vm44_vm0, %v178_v20, 0.0 }
  0xbb   :  { %58 = vadd.xlane.f32.xlu0 %v57_v22  ;;  %v87_v23 = vsel %vm44_vm0, %v180_v21, 0.0 }
  0xbd   :  { %v182_v24 = vpop.eup %181 }
  0xbe   :  { %v184_v25 = vpop.eup %183  ;;  %v60_v26 = vsel %vm44_vm0, %v182_v24, 0.0 }
  0xbf   :  { %88 = vadd.xlane.f32.xlu0 %v87_v23  ;;  %61 = vadd.xlane.f32.xlu1 %v60_v26  ;;  %v90_v27 = vsel %vm44_vm0, %v184_v25, 0.0 }
  0xc3   :  { %91 = vadd.xlane.f32.xlu1 %v90_v27 }
 0x144   :  { %v59_v28 = vpop.xlane.xlu0 %58 }
 0x145   :  { %185 = vrcp.f32 %v59_v28 }
 0x148   :  { %v62_v29 = vpop.xlane.xlu1 %61  ;;  %v89_v30 = vpop.xlane.xlu0 %88 }
 0x149   :  { %187 = vrcp.f32 %v62_v29 }
 0x14a   :  { %189 = vrcp.f32 %v89_v30 }
 0x14c   :  { %v92_v31 = vpop.xlane.xlu1 %91 }
 0x14d   :  { %191 = vrcp.f32 %v92_v31 }
 0x14e   :  { %193 = vlog2.f32 %v59_v28 }
 0x14f   :  { %195 = vlog2.f32 %v89_v30 }
 0x150   :  { %197 = vlog2.f32 %v62_v29 }
 0x151   :  { %199 = vlog2.f32 %v92_v31 }
 0x152   :  { %v186_v32 = vpop.eup %185 }
 0x153   :  { %v73_v35 = vmul.f32 %v186_v32, %v178_v20 }
 0x156   :  { %v188_v33 = vpop.eup %187 }
 0x157   :  { %v190_v34 = vpop.eup %189  ;;  %v74_v38 = vmul.f32 %v188_v33, %v182_v24 }
 0x158   :  { %v103_v36 = vmul.f32 %v190_v34, %v180_v21 }
 0x15a   :  { %v192_v37 = vpop.eup %191  ;;  %v105_v40 = vadd.f32 %v103_v36, %v73_v35 }
 0x15b   :  { %v104_v39 = vmul.f32 %v192_v37, %v184_v25  ;;  %v194_v44 = vpop.eup %193 }
 0x15c   :  { %v107_v42 = vmul.f32 0.5, %v105_v40  ;;  %v196_v45 = vpop.eup %195  ;;  %v64_v48 = vmul.f32 0.6931472, %v194_v44 }
 0x15d   :  { %v106_v41 = vadd.f32 %v104_v39, %v74_v38  ;;  %v198_v46 = vpop.eup %197  ;;  %v94_v49 = vmul.f32 0.6931472, %v196_v45 }
 0x15e   :  { %201 = vlog2.f32 %v107_v42  ;;  %v200_v47 = vpop.eup %199  ;;  %v66_v50 = vmul.f32 0.6931472, %v198_v46  ;;  %v67_v53 = vsub.f32 %v301_v10, %v64_v48 }
 0x15f   :  { %v108_v43 = vmul.f32 0.5, %v106_v41  ;;  %v96_v51 = vmul.f32 0.6931472, %v200_v47  ;;  %v97_v54 = vsub.f32 %v303_v11, %v94_v49 }
 0x160   :  { %v68_v57 = vsub.f32 %v307_v16, %v66_v50  ;;  %v124_v16 = vlaneseq }
 0x161   :  { %203 = vlog2.f32 %v108_v43  ;;  %v98_v58 = vsub.f32 %v309_v17, %v96_v51 }
 0x162   :  { %v125_v17 = vshrl.u32 %v124_v16, 7  ;;  %v147_v18 = vand.u32 127, %v124_v16 }
 0x164   :  { %vm148_vm1 = vcmp.eq.s32.totalorder %v125_v17, 0  ;;  %vm149_vm2 = vcmp.eq.s32.totalorder %v147_v18, 0 }
 0x165   :  { %vm150_vm3 = vmand %vm148_vm1, %vm149_vm2 }
 0x16b   :  { %v202_v52 = vpop.eup %201 }
 0x16c   :  { %v110_v55 = vmul.f32 0.6931472, %v202_v52 }
 0x16e   :  { %v204_v56 = vpop.eup %203  ;;  %v113_v60 = vsub.f32 %v67_v53, %v110_v55  ;;  %v117_v61 = vsub.f32 %v97_v54, %v110_v55 }
 0x16f   :  { %v112_v59 = vmul.f32 0.6931472, %v204_v56 }
 0x170   :  { %v115_v0 = vmul.f32 %v113_v60, %v73_v35  ;;  %v119_v1 = vmul.f32 %v117_v61, %v103_v36 }
 0x171   :  { %v118_v62 = vsub.f32 %v98_v58, %v112_v59  ;;  %v114_v63 = vsub.f32 %v68_v57, %v112_v59 }
 0x172   :  { %v121_v4 = vadd.f32 %v119_v1, %v115_v0 }
 0x173   :  { %v116_v2 = vmul.f32 %v114_v63, %v74_v38  ;;  %v120_v3 = vmul.f32 %v118_v62, %v104_v39 }
 0x174   :  { %v134_v6 = vsel %vm44_vm0, %v121_v4, 0.0 }
 0x175   :  { %v122_v5 = vadd.f32 %v120_v3, %v116_v2 }
 0x177   :  { %v135_v7 = vsel %vm44_vm0, %v122_v5, 0.0 }
 0x178   :  { %v136_v8 = vadd.f32 %v135_v7, %v134_v6 }
 0x17a   :  { %137 = vadd.xlane.f32.xlu0 %v136_v8 }
 0x203   :  { %v138_v9 = vpop.xlane.xlu0 %137 }
 0x204   :  { %v139_v10 = vrot.slane %v138_v9, 4 }
 0x206   :  { %v140_v11 = vadd.f32 %v139_v10, %v138_v9 }
 0x208   :  { %v141_v12 = vrot.slane %v140_v11, 2 }
 0x20a   :  { %v142_v13 = vadd.f32 %v141_v12, %v140_v11 }
 0x20c   :  { %v143_v14 = vrot.slane %v142_v13, 1 }
 0x20e   :  { %v144_v15 = vadd.f32 %v143_v14, %v142_v13 }
 0x210   :  { %170 = vpush %v144_v15 }
 0x241   :  { %s171_s21 = spop %170 }
 0x242   :  { %v151_v19 = vstv %s171_s21 }
 0x243   :  { %v152_v20 = vsel %vm150_vm3, %v151_v19, 0.0 }
 0x244   :  { %153 = vst [vmem:[#allocation7] sm:$0xff] %v152_v20 }
 0x245   :  { %256 = shalt.err (!%p253_p0)
}
 0x246   :  { %163 = dma.vmem_to_hbm [thread:$0]  %s161_s1, 128, %s328_s2, [#allocation4]  }
 0x247   :  { %269 = dma.done.wait [#allocation4], 128  }
 0x248   :  { %270 = vsyncadd [#allocation4], 4294967168 }
 0x249   :  { %167 = vsyncpa [#allocation3], 1 }
 0x24a   :  { %168 = vsyncpa [#allocation6], 1 }
 0x24b   :  { %169 = vsyncpa [#allocation4], 1 }

</bundles_post_ra>
